<compile_context>
chip_gen: v7x
topology: tpu7x:2x2x1
jax: 0.10.0
libtpu: 0.0.40
codegen_flags: <defaults>
</compile_context>

<pallas_src>
import functools

import jax
import jax.numpy as jnp
from jax.experimental import pallas as pl
from jax.experimental.pallas import tpu as pltpu

LANE = 128
SUBLANE = 8

# ~20 B of HBM traffic per output lane (4 f32 reads + 1 f32 write).
# 262144 lanes/step -> ~5 MB/step, ~10 MB double-buffered VMEM.
DEFAULT_BLOCK_LANES = 262144


# ----------------------------- MaxPool2d(2, 2) ------------------------------

def _maxpool_kernel(x_ref, o_ref):
    # x_ref: (4, brows, 128) window-position x (8,128)-dense output lanes.
    # Pairwise elementwise maxima on the VPU; no XLU reduce, no masked stores.
    m01 = jnp.maximum(x_ref[0], x_ref[1])
    m23 = jnp.maximum(x_ref[2], x_ref[3])
    o_ref[...] = jnp.maximum(m01, m23)


def _to_window_layout(x):
    """(N, C, H, W) -> (4, M), M = N*C*(H//2)*(W//2).

    Axis 0 enumerates the 2x2 window positions, axis 1 the output pixels in
    row-major (n, c, i, j) order.
    """
    n, c, h, w = x.shape
    x = x.reshape(n, c, h // 2, 2, w // 2, 2)
    x = x.transpose(3, 5, 0, 1, 2, 4)          # (2, 2, N, C, H//2, W//2)
    return x.reshape(4, n * c * (h // 2) * (w // 2))


def maxpool2x2(x, block_lanes=DEFAULT_BLOCK_LANES):
    """2x2 / stride-2 max pool (== nn.MaxPool2d(2, 2)) as a Pallas TPU kernel."""
    n, c, h, w = x.shape
    assert h % 2 == 0 and w % 2 == 0, "MaxPool2d(2,2) needs even H, W"
    m = n * c * (h // 2) * (w // 2)

    xw = _to_window_layout(x)                                   # (4, m)

    # Pad M up to a multiple of 8*128 so the 3-D layout is (8, 128)-dense.
    m_pad = -(-m // (SUBLANE * LANE)) * (SUBLANE * LANE)
    if m_pad != m:
        xw = jnp.pad(xw, ((0, 0), (0, m_pad - m)))
    rows = m_pad // LANE
    xw3 = xw.reshape(4, rows, LANE)                             # dense layout

    # Block rows: a multiple of 8, capped by block_lanes, and small enough to
    # give >= ~8 grid steps so both v7x TensorCores get work.
    max_rows = max(SUBLANE, (block_lanes // LANE // SUBLANE) * SUBLANE)
    tgt_rows = -(-rows // 8)                                    # aim for >= 8 steps
    tgt_rows = -(-tgt_rows // SUBLANE) * SUBLANE                # sublane multiple
    brows = max(SUBLANE, min(max_rows, tgt_rows, rows))
    grid = (pl.cdiv(rows, brows),)                              # last block may be partial

    out3 = pl.pallas_call(
        _maxpool_kernel,
        out_shape=jax.ShapeDtypeStruct((rows, LANE), x.dtype),
        grid_spec=pltpu.PrefetchScalarGridSpec(
            num_scalar_prefetch=0,
            grid=grid,
            in_specs=[pl.BlockSpec((4, brows, LANE), lambda i: (0, i, 0))],
            out_specs=pl.BlockSpec((brows, LANE), lambda i: (i, 0)),
        ),
        compiler_params=pltpu.CompilerParams(
            dimension_semantics=("parallel",),
            vmem_limit_bytes=48 * 1024 * 1024,
        ),
    )(xw3)

    out = out3.reshape(m_pad)[:m]
    return out.reshape(n, c, h // 2, w // 2)


# ------------------------------ Linear (fc) ---------------------------------

def _linear_kernel(x_ref, w_ref, b_ref, o_ref):
    acc = jnp.dot(x_ref[...], w_ref[...], preferred_element_type=jnp.float32)
    o_ref[...] = (acc + b_ref[...]).astype(o_ref.dtype)


def linear(x, w, b):
    """out = x @ w + b (== nn.Linear) as a single-block Pallas kernel."""
    bsz, k = x.shape
    k2, n_out = w.shape
    assert k == k2
    return pl.pallas_call(
        _linear_kernel,
        out_shape=jax.ShapeDtypeStruct((bsz, n_out), x.dtype),
        grid=(1,),
        in_specs=[
            pl.BlockSpec((bsz, k), lambda i: (0, 0)),
            pl.BlockSpec((k, n_out), lambda i: (0, 0)),
            pl.BlockSpec((1, n_out), lambda i: (0, 0)),
        ],
        out_specs=pl.BlockSpec((bsz, n_out), lambda i: (0, 0)),
    )(x, w, b.reshape(1, n_out))


# ----------------------- Conv / BN / ReLU (left to XLA) ----------------------

def conv_bn_relu(x, w, b, gamma, beta, mean, var, eps=1e-5):
    # TODO(synk): dense 3x3 conv / BatchNorm / ReLU are left to XLA (MXU-optimal
    # there); the Pallas kernels in this script cover MaxPool2d and Linear.
    y = jax.lax.conv_general_dilated(
        x, w, window_strides=(1, 1), padding="SAME",
        dimension_numbers=("NCHW", "OIHW", "NCHW"))
    y = y + b[None, :, None, None]
    inv = gamma * jax.lax.rsqrt(var + eps)
    y = y * inv[None, :, None, None] + (beta - mean * inv)[None, :, None, None]
    return jnp.maximum(y, 0.0)


# ------------------------------- Full model ----------------------------------

CFG = [64, 64, "M", 128, 128, "M", 256, 256, 256, "M",
       512, 512, 512, "M", 512, 512, 512, "M"]


def init_params(key):
    conv_params = []
    c_in = 3
    for v in CFG:
        if v == "M":
            continue
        key, kw, kg, kb = jax.random.split(key, 4)
        w = jax.random.normal(kw, (v, c_in, 3, 3), jnp.float32) * jnp.sqrt(2.0 / (c_in * 9))
        conv_params.append(dict(
            w=w,
            b=jnp.zeros((v,), jnp.float32),
            gamma=1.0 + 0.1 * jax.random.normal(kg, (v,), jnp.float32),
            beta=0.1 * jax.random.normal(kb, (v,), jnp.float32),
            mean=jnp.zeros((v,), jnp.float32),
            var=jnp.ones((v,), jnp.float32),
        ))
        c_in = v
    key, kfw, kfb = jax.random.split(key, 3)
    fc_w = jax.random.normal(kfw, (512, 100), jnp.float32) * jnp.sqrt(1.0 / 512.0)
    fc_b = 0.01 * jax.random.normal(kfb, (100,), jnp.float32)
    return conv_params, (fc_w, fc_b)


def ref_maxpool2x2(x):
    n, c, h, w = x.shape
    return x.reshape(n, c, h // 2, 2, w // 2, 2).max(axis=(3, 5))


def ref_linear(x, w, b):
    return jnp.dot(x, w, precision=jax.lax.Precision.HIGHEST) + b


def cnn_forward(x, conv_params, fc_params, *, use_pallas=True):
    pool = maxpool2x2 if use_pallas else ref_maxpool2x2
    lin = linear if use_pallas else ref_linear
    idx = 0
    for v in CFG:
        if v == "M":
            x = pool(x)
        else:
            x = conv_bn_relu(x, **conv_params[idx])
            idx += 1
    x = x.reshape(x.shape[0], -1)                 # (N, 512)
    return lin(x, *fc_params)                     # (N, 100)


if __name__ == "__main__":
    key = jax.random.PRNGKey(0)
    k_in, k_p, k_a, k_b = jax.random.split(key, 4)

    # --- standalone maxpool kernel checks (exact) ---
    # non-128-aligned M -> exercises the pad + slice path
    xa = jax.random.normal(k_a, (2, 3, 10, 10), jnp.float32)
    ya = jax.block_until_ready(maxpool2x2(xa))
    assert ya.shape == (2, 3, 5, 5)
    assert jnp.array_equal(ya, ref_maxpool2x2(xa))

    # small block -> multi-step grid with partial-block masking
    xb = jax.random.normal(k_b, (2, 64, 32, 32), jnp.float32)
    yb = jax.block_until_ready(maxpool2x2(xb, block_lanes=1024))
    assert jnp.array_equal(yb, ref_maxpool2x2(xb))

    # --- full CNN forward: Pallas pool/fc vs pure-JAX reference ---
    conv_params, fc_params = init_params(k_p)
    x = jax.random.normal(k_in, (2, 3, 32, 32), jnp.float32)

    fwd_pallas = jax.jit(functools.partial(cnn_forward, use_pallas=True))
    fwd_ref = jax.jit(functools.partial(cnn_forward, use_pallas=False))

    out_p = jax.block_until_ready(fwd_pallas(x, conv_params, fc_params))
    out_r = jax.block_until_ready(fwd_ref(x, conv_params, fc_params))

    assert out_p.shape == (2, 100)
    assert jnp.allclose(out_p, out_r, atol=5e-3, rtol=5e-3)

    print("KERNEL_OK")
</pallas_src>

<mosaic_0001>
module attributes {stable_mosaic.version = 11 : i64} {
  func.func @_maxpool_kernel(%arg0: i32, %arg1: memref<4x8x128xf32, #tpu.memory_space<vmem>>, %arg2: memref<8x128xf32, #tpu.memory_space<vmem>>) attributes {dimension_semantics = [#tpu.dimension_semantics<parallel>], iteration_bounds = array<i64: 1>, scalar_prefetch = 0 : i64, scratch_operands = 0 : i64, tpu.core_type = #tpu.core_type<tc>, window_params = [{transform_indices = @transform_0, window_bounds = array<i64: 4, 8, 128>}, {transform_indices = @transform_1, window_bounds = array<i64: 8, 128>}]} {
    %c0 = arith.constant 0 : index
    %c0_0 = arith.constant 0 : index
    %c0_1 = arith.constant 0 : index
    %0 = vector.load %arg1[%c0, %c0_0, %c0_1] : memref<4x8x128xf32, #tpu.memory_space<vmem>>, vector<1x8x128xf32>
    %1 = vector.shape_cast %0 : vector<1x8x128xf32> to vector<8x128xf32>
    %c1 = arith.constant 1 : index
    %c0_2 = arith.constant 0 : index
    %c0_3 = arith.constant 0 : index
    %2 = vector.load %arg1[%c1, %c0_2, %c0_3] : memref<4x8x128xf32, #tpu.memory_space<vmem>>, vector<1x8x128xf32>
    %3 = vector.shape_cast %2 : vector<1x8x128xf32> to vector<8x128xf32>
    %4 = arith.maximumf %1, %3 : vector<8x128xf32>
    %c2 = arith.constant 2 : index
    %c0_4 = arith.constant 0 : index
    %c0_5 = arith.constant 0 : index
    %5 = vector.load %arg1[%c2, %c0_4, %c0_5] : memref<4x8x128xf32, #tpu.memory_space<vmem>>, vector<1x8x128xf32>
    %6 = vector.shape_cast %5 : vector<1x8x128xf32> to vector<8x128xf32>
    %c3 = arith.constant 3 : index
    %c0_6 = arith.constant 0 : index
    %c0_7 = arith.constant 0 : index
    %7 = vector.load %arg1[%c3, %c0_6, %c0_7] : memref<4x8x128xf32, #tpu.memory_space<vmem>>, vector<1x8x128xf32>
    %8 = vector.shape_cast %7 : vector<1x8x128xf32> to vector<8x128xf32>
    %9 = arith.maximumf %6, %8 : vector<8x128xf32>
    %10 = arith.maximumf %4, %9 : vector<8x128xf32>
    %c0_8 = arith.constant 0 : index
    %c0_9 = arith.constant 0 : index
    %11 = vector.load %arg2[%c0_8, %c0_9] : memref<8x128xf32, #tpu.memory_space<vmem>>, vector<8x128xf32>
    tpu.vector_store %arg2[%c0_8, %c0_9], %10 {strides = array<i32>} : memref<8x128xf32, #tpu.memory_space<vmem>>, vector<8x128xf32>,
    return
  }
  func.func @transform_0(%arg0: i32) -> (i32, i32, i32) {
    %c0_i32 = arith.constant 0 : i32
    %c0_i32_0 = arith.constant 0 : i32
    %c0_i32_1 = arith.constant 0 : i32
    return %c0_i32, %arg0, %c0_i32_0 : i32, i32, i32
  }
  func.func @transform_1(%arg0: i32) -> (i32, i32) {
    %c0_i32 = arith.constant 0 : i32
    %c0_i32_0 = arith.constant 0 : i32
    return %arg0, %c0_i32 : i32, i32
  }
}

</mosaic_0001>

<bundles_post_ra>
// kernel: tpu_custom_call.1
= control target key start
LH: loop header
LB: loop body
LE: loop exit
PB: predicated region body
PF: predicated region fallthrough
CT: control target
= control target key end

     0   :  { %6 = vsyncpa [#allocation3], 0  ;;  %s139_s0 = inlined_call_operand.hbm [shape: f32[4,8,128], index: 0, kind: input, shape index: {}]   ;;  %s140_s1 = inlined_call_operand.hbm [shape: f32[8,128], index: 1, kind: output, shape index: {}]  }
   0x1   :  { %7 = vsyncpa [#allocation4], 0  ;;  %s101_s6 = smov [#allocation2]   ;;  %s53_s10 = scalar_lea.hbm %s139_s0, 512 }
   0x2   :  { %s13_s7 = sshll.u32 %s101_s6, 4  ;;  %p54_p0 = scmp.ne.s32.totalorder %s139_s0, %s53_s10  ;;  %s14_s7 = int_to_ptr.vmem [resolvable:$true] %s13_s7 }
   0x3   :  { %p57_p1 = scmp.lt.u32.totalorder %s53_s10, %s139_s0 }
   0x5   :  { %p59_p2 = pnand %p57_p1, %p54_p0 }
   0x7   :  { %62 = shalt.err (!%p59_p2)
}
   0x8   :  { %s63_s15 = scalar_lea.vmem %s14_s7, 512  ;;  %p68_p4 = scmp.lt.s32.totalorder %s14_s7, %s14_s7 }
   0x9   :  { %p64_p3 = scmp.ne.s32.totalorder %s14_s7, %s63_s15  ;;  %p69_p5 = scmp.lt.s32.totalorder %s63_s15, %s63_s15 }
   0xb   :  { %p70_p6 = por %p69_p5, %p68_p4 }
   0xd   :  { %p71_p7 = pnand %p70_p6, %p64_p3 }
   0xf   :  { %74 = shalt.err (!%p71_p7)
}
  0x10   :  { %s102_s16 = smov 128   ;;  %s103_s17 = smov 8  }
  0x11   :  { %19 = dma.hbm_to_vmem [thread:$0]  %s139_s0, 512, %s14_s7, [#allocation3], %s102_s16, %s102_s16, %s103_s17  }
  0x12   :  { %97 = dma.done.wait [#allocation3], 512  }
  0x13   :  { %98 = vsyncadd [#allocation3], 4294966784  ;;  %v23_v0 = vld [vmem:[#allocation2] sm:$0xff]  ;;  %v25_v1 = vld [vmem:[#allocation2 + $0x8] sm:$0xff]  ;;  %s104_s20 = smov [#allocation5]  }
  0x14   :  { %v28_v2 = vld [vmem:[#allocation2 + $0x10] sm:$0xff]  ;;  %v26_v3 = vmax.f32 %v23_v0, %v25_v1  ;;  %v30_v4 = vld [vmem:[#allocation2 + $0x18] sm:$0xff]  ;;  %s40_s21 = sshll.u32 %s104_s20, 4  ;;  %s41_s21 = int_to_ptr.vmem [resolvable:$true] %s40_s21 }
  0x15   :  { %v31_v5 = vmax.f32 %v28_v2, %v30_v4  ;;  %s75_s22 = scalar_lea.vmem %s41_s21, 128  ;;  %p80_p9 = scmp.lt.s32.totalorder %s41_s21, %s41_s21 }
  0x16   :  { %p76_p8 = scmp.ne.s32.totalorder %s41_s21, %s75_s22  ;;  %p81_p10 = scmp.lt.s32.totalorder %s75_s22, %s75_s22 }
  0x17   :  { %v32_v6 = vmax.f32 %v26_v3, %v31_v5 }
  0x18   :  { %p82_p11 = por %p81_p10, %p80_p9 }
  0x19   :  { %33 = vst [vmem:[#allocation5] sm:$0xff] %v32_v6 }
  0x1a   :  { %p83_p12 = pnand %p82_p11, %p76_p8 }
  0x1c   :  { %86 = shalt.err (!%p83_p12)
}
  0x1d   :  { %s87_s24 = scalar_lea.hbm %s140_s1, 128 }
  0x1e   :  { %p88_p13 = scmp.ne.s32.totalorder %s140_s1, %s87_s24  ;;  %p91_p0 = scmp.lt.u32.totalorder %s87_s24, %s140_s1 }
  0x20   :  { %p93_p1 = pnand %p91_p0, %p88_p13 }
  0x22   :  { %96 = shalt.err (!%p93_p1)
}
  0x23   :  { %43 = dma.vmem_to_hbm [thread:$0]  %s41_s21, 128, %s140_s1, [#allocation4]  }
  0x24   :  { %99 = dma.done.wait [#allocation4], 128  }
  0x25   :  { %100 = vsyncadd [#allocation4], 4294967168 }
  0x26   :  { %47 = vsyncpa [#allocation3], 1 }
  0x27   :  { %48 = vsyncpa [#allocation4], 1 }

</bundles_post_ra>
